<compile_context>
chip_gen: v7x
topology: tpu7x:2x2x1
jax: 0.10.0
libtpu: 0.0.40
codegen_flags: <defaults>
</compile_context>

<pallas_src>
import functools

import jax
import jax.numpy as jnp
from jax import lax
from jax.experimental import pallas as pl
from jax.experimental.pallas import tpu as pltpu

ACT_NONE, ACT_SILU, ACT_RELU = 0, 1, 2


def _round_up(x, m):
    return (x + m - 1) // m * m


# --------------------------------------------------------------------------
# Per-generation tiling / VMEM configuration (best-effort, safe fallbacks)
# --------------------------------------------------------------------------
def _detect_hw():
    kind = ""
    try:
        kind = jax.devices()[0].device_kind.lower()
    except Exception:
        pass
    if "v7" in kind or "tpu7" in kind:
        gen = "v7"
    elif "v6" in kind or "tpu6" in kind:
        gen = "v6"
    elif "v5" in kind:
        gen = "v5"
    else:
        gen = "unknown"
    vmem = None
    try:
        vmem = int(pltpu.get_tpu_info().vmem_capacity_bytes)
    except Exception:
        vmem = None
    if vmem is None:
        vmem = (64 << 20) if gen in ("v7", "unknown") else (128 << 20)
    if gen == "v6":
        cfg = dict(tm=2048, tn=1024, tk=256, buffers=3, cores=1)
    elif gen == "v5":
        cfg = dict(tm=1024, tn=512, tk=256, buffers=2, cores=1)
    elif gen == "v7":
        cfg = dict(tm=1024, tn=512, tk=256, buffers=2, cores=2)
    else:  # conservative default (v7x-like 64 MiB budget, 2 TCs)
        cfg = dict(tm=1024, tn=512, tk=256, buffers=2, cores=2)
    cfg["vmem"] = vmem
    return cfg


_HW = _detect_hw()


def _choose_tk(K, tk_pref):
    """Pick tk (multiple of 128) minimizing K zero-padding; prefer larger."""
    tk_pref = min(tk_pref, _round_up(K, 128))
    best, best_pad = tk_pref, _round_up(K, tk_pref)
    for cand in (256, 128):
        if cand >= best:
            continue
        pad = _round_up(K, cand)
        if pad < best_pad:
            best, best_pad = cand, pad
    return best


def _block_spec(shape, index_map, buffers=None):
    """BlockSpec with optional deeper pipelining; falls back if unsupported."""
    if buffers is not None and buffers > 2:
        try:
            return pl.BlockSpec(shape, index_map,
                                pipeline_mode=pl.Buffered(buffers))
        except Exception:
            pass
    return pl.BlockSpec(shape, index_map)


def _vmem_budget(tm, tn, tk, has_res, buffers, phys):
    nbuf = max(2, buffers)
    ws = (tm * tk * 2 * nbuf                      # x tiles (bf16)
          + tk * tn * 2 * nbuf                    # w tiles (bf16)
          + tn * 4 * 2                            # bias (f32)
          + tm * tn * 2 * 2                       # output tiles (bf16)
          + (tm * tn * 2 * 2 if has_res else 0)   # residual tiles (bf16)
          + tm * tn * 4)                          # f32 accumulator
    budget = max(16 << 20, 2 * ws + (8 << 20))
    return int(min(budget, phys * 3 // 4))


# --------------------------------------------------------------------------
# Pallas kernels
# --------------------------------------------------------------------------
def _mm_kernel(act_id, has_residual, x_ref, w_ref, b_ref, *rest):
    """Tiled matmul with K-reduction accumulator and fused epilogue."""
    if has_residual:
        r_ref, o_ref, acc_ref = rest
    else:
        o_ref, acc_ref = rest
    k = pl.program_id(2)

    @pl.when(k == 0)
    def _():
        acc_ref[...] = jnp.zeros_like(acc_ref)

    acc_ref[...] += jnp.dot(x_ref[...], w_ref[...],
                            preferred_element_type=jnp.float32)

    @pl.when(k == pl.num_programs(2) - 1)
    def _():
        # Epilogue fully in f32 (v5e has no bf16 VPU/EUP path); cast only at
        # the final store.
        acc = acc_ref[...] + b_ref[...]
        if has_residual:
            acc = acc + r_ref[...].astype(jnp.float32)
        if act_id == ACT_SILU:
            # sigmoid via EUP exp + approx reciprocal (off the VPU divide path)
            acc = acc * pl.reciprocal(1.0 + jnp.exp(-acc), approx=True)
        elif act_id == ACT_RELU:
            acc = jnp.maximum(acc, 0.0)
        o_ref[...] = acc.astype(o_ref.dtype)


def _maxpool_kernel(x_ref, o_ref):
    # x_ref: (k*k, tm, tn) window stack; reduce over the window axis.
    o_ref[...] = jnp.max(x_ref[...], axis=0)


# --------------------------------------------------------------------------
# Pallas call wrappers
# --------------------------------------------------------------------------
def fused_matmul(x, w, b, *, act_id=ACT_NONE, residual=None):
    """out = act(x @ w + b [+ residual]); bf16 operands/output, f32 accum."""
    M, K = x.shape
    Kw, N = w.shape
    assert K == Kw

    tm = min(_HW["tm"], _round_up(M, 8))
    tn = min(_HW["tn"], _round_up(N, 128))
    tk = _choose_tk(K, _HW["tk"])
    # Keep the parallel (M, N) grid >= #TensorCores so megacore sharding has
    # work for every core (v7x has 2 TCs/chip).
    if _HW["cores"] > 1:
        while pl.cdiv(M, tm) * pl.cdiv(N, tn) < _HW["cores"] and tm > 256:
            tm //= 2

    Mp, Kp, Np = _round_up(M, tm), _round_up(K, tk), _round_up(N, tn)

    xp = jnp.pad(x.astype(jnp.bfloat16), ((0, Mp - M), (0, Kp - K)))
    wp = jnp.pad(w.astype(jnp.bfloat16), ((0, Kp - K), (0, Np - N)))
    bp = jnp.pad(b.reshape(1, N).astype(jnp.float32), ((0, 0), (0, Np - N)))

    buffers = _HW["buffers"]
    operands = [xp, wp, bp]
    in_specs = [
        _block_spec((tm, tk), lambda i, j, kk: (i, kk), buffers),
        _block_spec((tk, tn), lambda i, j, kk: (kk, j), buffers),
        pl.BlockSpec((1, tn), lambda i, j, kk: (0, j)),
    ]
    has_res = residual is not None
    if has_res:
        rp = jnp.pad(residual.astype(jnp.bfloat16),
                     ((0, Mp - M), (0, Np - N)))
        operands.append(rp)
        # Same block/index_map as the output -> fetched once per (i, j).
        in_specs.append(pl.BlockSpec((tm, tn), lambda i, j, kk: (i, j)))

    grid = (Mp // tm, Np // tn, Kp // tk)
    bytes_accessed = (xp.size * 2 + wp.size * 2 + bp.size * 4
                      + Mp * Np * 2 + (Mp * Np * 2 if has_res else 0))

    out = pl.pallas_call(
        functools.partial(_mm_kernel, act_id, has_res),
        out_shape=jax.ShapeDtypeStruct((Mp, Np), jnp.bfloat16),
        grid_spec=pltpu.PrefetchScalarGridSpec(
            num_scalar_prefetch=0,
            grid=grid,
            in_specs=in_specs,
            out_specs=pl.BlockSpec((tm, tn), lambda i, j, kk: (i, j)),
            scratch_shapes=[pltpu.VMEM((tm, tn), jnp.float32)],
        ),
        compiler_params=pltpu.CompilerParams(
            dimension_semantics=("parallel", "parallel", "arbitrary"),
            vmem_limit_bytes=_vmem_budget(tm, tn, tk, has_res, buffers,
                                          _HW["vmem"]),
        ),
        cost_estimate=pl.CostEstimate(
            flops=int(2 * Mp * Kp * Np),
            transcendentals=int(Mp * Np) if act_id == ACT_SILU else 0,
            bytes_accessed=int(bytes_accessed),
        ),
    )(*operands)
    return out[:M, :N]


def pallas_window_max(stacked):
    """Max over the leading (window) axis of a (k*k, M, C) bf16 stack."""
    KK, M, C = stacked.shape
    tm = min(512, _round_up(M, 8))
    tn = min(512, _round_up(C, 128))
    Mp, Cp = _round_up(M, tm), _round_up(C, tn)
    sp = jnp.pad(stacked.astype(jnp.bfloat16),
                 ((0, 0), (0, Mp - M), (0, Cp - C)))
    tile_bytes = KK * tm * tn * 2 * 2 + tm * tn * 2 * 2
    budget = int(min(max(16 << 20, 2 * tile_bytes + (8 << 20)),
                     _HW["vmem"] * 3 // 4))
    out = pl.pallas_call(
        _maxpool_kernel,
        out_shape=jax.ShapeDtypeStruct((Mp, Cp), jnp.bfloat16),
        grid=(Mp // tm, Cp // tn),
        in_specs=[pl.BlockSpec((KK, tm, tn), lambda i, j: (0, i, j))],
        out_specs=pl.BlockSpec((tm, tn), lambda i, j: (i, j)),
        compiler_params=pltpu.CompilerParams(
            dimension_semantics=("parallel", "parallel"),
            vmem_limit_bytes=budget,
        ),
    )(sp)
    return out[:M, :C]


# --------------------------------------------------------------------------
# Glue: im2col patch extraction (bf16), pooling window extraction (bf16)
# --------------------------------------------------------------------------
def _im2col(x, k, s, p):
    x = x.astype(jnp.bfloat16)     # cast BEFORE the k*k duplication (half HBM)
    N, H, W, C = x.shape
    xp = jnp.pad(x, ((0, 0), (p, p), (p, p), (0, 0)))
    Ho = (H + 2 * p - k) // s + 1
    Wo = (W + 2 * p - k) // s + 1
    cols = []
    for i in range(k):
        for j in range(k):
            cols.append(xp[:, i:i + s * Ho:s, j:j + s * Wo:s, :])
    patches = jnp.stack(cols, axis=-2)            # (N, Ho, Wo, k*k, C)
    return patches.reshape(N * Ho * Wo, k * k * C), (N, Ho, Wo)


def conv_bn_act(x, wmat, bias, k, s, p, act_id):
    patches, (N, Ho, Wo) = _im2col(x, k, s, p)
    out = fused_matmul(patches, wmat, bias, act_id=act_id)
    return out.reshape(N, Ho, Wo, -1)


def conv_bn_add_relu(x, wmat, bias, k, s, p, residual):
    patches, (N, Ho, Wo) = _im2col(x, k, s, p)
    r = residual.reshape(N * Ho * Wo, -1)
    out = fused_matmul(patches, wmat, bias, act_id=ACT_RELU, residual=r)
    return out.reshape(N, Ho, Wo, -1)


def maxpool_3x3_s2_p1(x):
    N, H, W, C = x.shape
    k, s, p = 3, 2, 1
    xp = jnp.pad(x.astype(jnp.bfloat16), ((0, 0), (p, p), (p, p), (0, 0)),
                 constant_values=-jnp.inf)
    Ho = (H + 2 * p - k) // s + 1
    Wo = (W + 2 * p - k) // s + 1
    wins = [xp[:, i:i + s * Ho:s, j:j + s * Wo:s, :]
            for i in range(k) for j in range(k)]
    stacked = jnp.stack(wins, axis=0).reshape(k * k, N * Ho * Wo, C)
    out = pallas_window_max(stacked)
    return out.reshape(N, Ho, Wo, C)


# --------------------------------------------------------------------------
# Deterministic parameter construction (Conv2d weight + folded BatchNorm)
# --------------------------------------------------------------------------
def make_conv_bn_params(key, c1, c2, k):
    kw, kg, kb, km, kv = jax.random.split(key, 5)
    w = jax.random.normal(kw, (k, k, c1, c2), jnp.float32) / jnp.sqrt(k * k * c1)
    gamma = 1.0 + 0.1 * jax.random.normal(kg, (c2,), jnp.float32)
    beta = 0.1 * jax.random.normal(kb, (c2,), jnp.float32)
    mean = 0.1 * jax.random.normal(km, (c2,), jnp.float32)
    var = 1.0 + jnp.abs(jax.random.normal(kv, (c2,), jnp.float32))
    scale = gamma / jnp.sqrt(var + 1e-5)                     # BN eps default
    wmat = (w * scale).reshape(k * k * c1, c2)               # rows = (kh,kw,cin)
    bias = beta - mean * scale
    return wmat.astype(jnp.bfloat16), bias                   # bf16 weights


def init_resnet18_layer(key, c1, c2, s=1, is_first=False, n=1):
    if is_first:
        return {"conv7": make_conv_bn_params(key, c1, c2, 7)}
    keys = jax.random.split(key, n)
    blocks = []
    for i in range(n):
        cin = c1 if i == 0 else c2
        stride = s if i == 0 else 1
        k1, k2, k3 = jax.random.split(keys[i], 3)
        blk = {"cv1": make_conv_bn_params(k1, cin, c2, 3),
               "cv2": make_conv_bn_params(k2, c2, c2, 3),
               "stride": stride}
        if stride != 1:
            blk["sc"] = make_conv_bn_params(k3, cin, c2, 1)
        blocks.append(blk)
    return {"blocks": blocks}


# --------------------------------------------------------------------------
# Forward passes (mirror the PyTorch module structure)
# --------------------------------------------------------------------------
def resnet18_block_forward(x, blk):
    s = blk["stride"]
    w1, b1 = blk["cv1"]
    y = conv_bn_act(x, w1, b1, k=3, s=s, p=1, act_id=ACT_SILU)       # cv1 (SiLU)
    if s != 1:
        ws, bs = blk["sc"]
        sc = conv_bn_act(x, ws, bs, k=1, s=s, p=0, act_id=ACT_NONE)  # shortcut
    else:
        sc = x                                                       # Identity
    w2, b2 = blk["cv2"]
    return conv_bn_add_relu(y, w2, b2, k=3, s=1, p=1, residual=sc)   # relu(cv2+sc)


def resnet18_layer_forward(x_nchw, params, is_first):
    x = jnp.transpose(x_nchw, (0, 2, 3, 1)).astype(jnp.bfloat16)   # NCHW->NHWC
    if is_first:
        w, b = params["conv7"]
        x = conv_bn_act(x, w, b, k=7, s=2, p=3, act_id=ACT_SILU)
        x = maxpool_3x3_s2_p1(x)
    else:
        for blk in params["blocks"]:
            x = resnet18_block_forward(x, blk)
    return jnp.transpose(x, (0, 3, 1, 2)).astype(jnp.float32)      # NHWC->NCHW


# --------------------------------------------------------------------------
# Pure-JAX reference (for self-check only; matches the kernel's bf16 rounding)
# --------------------------------------------------------------------------
def _ref_conv(x, wmat, bias, k, s, p, act_id, cin):
    w = wmat.astype(jnp.float32).reshape(k, k, cin, -1)
    xq = x.astype(jnp.bfloat16).astype(jnp.float32)
    wq = w.astype(jnp.bfloat16).astype(jnp.float32)
    y = lax.conv_general_dilated(
        xq, wq, (s, s), [(p, p), (p, p)],
        dimension_numbers=("NHWC", "HWIO", "NHWC")) + bias
    if act_id == ACT_SILU:
        y = y * jax.nn.sigmoid(y)
    elif act_id == ACT_RELU:
        y = jnp.maximum(y, 0.0)
    return y


def _ref_layer(x_nchw, params, is_first, c1):
    x = jnp.transpose(x_nchw, (0, 2, 3, 1))
    if is_first:
        w, b = params["conv7"]
        x = _ref_conv(x, w, b, 7, 2, 3, ACT_SILU, c1)
        x = lax.reduce_window(x, -jnp.inf, lax.max, (1, 3, 3, 1), (1, 2, 2, 1),
                              [(0, 0), (1, 1), (1, 1), (0, 0)])
    else:
        cin = c1
        for blk in params["blocks"]:
            s = blk["stride"]
            w1, b1 = blk["cv1"]
            y = _ref_conv(x, w1, b1, 3, s, 1, ACT_SILU, cin)
            if s != 1:
                ws, bs = blk["sc"]
                sc = _ref_conv(x, ws, bs, 1, s, 0, ACT_NONE, cin)
            else:
                sc = x
            w2, b2 = blk["cv2"]
            c2 = w2.shape[-1]
            x = jnp.maximum(_ref_conv(y, w2, b2, 3, 1, 1, ACT_NONE, c2) + sc, 0.0)
            cin = c2
    return jnp.transpose(x, (0, 3, 1, 2))


# --------------------------------------------------------------------------
if __name__ == "__main__":
    key = jax.random.PRNGKey(0)
    kx, kp1, kp2 = jax.random.split(key, 3)

    c1, c2 = 4, 8
    x = jax.random.normal(kx, (2, c1, 16, 16), jnp.float32)   # NCHW, like PyTorch

    # Case 1: is_first=True  -> Conv(k=7,s=2,p=3,SiLU) + MaxPool2d(3,2,1)
    params_first = init_resnet18_layer(kp1, c1, c2, is_first=True)
    y_first = resnet18_layer_forward(x, params_first, is_first=True)
    y_first = jax.block_until_ready(y_first)

    # Case 2: is_first=False -> ResNet18Block(c1,c2,s=2) + ResNet18Block(c2,c2,1)
    params_layer = init_resnet18_layer(kp2, c1, c2, s=2, is_first=False, n=2)
    y_layer = resnet18_layer_forward(x, params_layer, is_first=False)
    y_layer = jax.block_until_ready(y_layer)

    # Self-check against a pure-JAX reference (bf16-matched operands).
    ref_first = _ref_layer(x, params_first, True, c1)
    ref_layer = _ref_layer(x, params_layer, False, c1)
    assert y_first.shape == (2, c2, 4, 4), y_first.shape
    assert y_layer.shape == (2, c2, 8, 8), y_layer.shape
    assert jnp.allclose(y_first, ref_first, rtol=2e-2, atol=2.5e-2)
    assert jnp.allclose(y_layer, ref_layer, rtol=2e-2, atol=2.5e-2)

    print("KERNEL_OK")
</pallas_src>

<mosaic_0001>
module attributes {stable_mosaic.version = 11 : i64} {
  func.func @_mm_kernel(%arg0: i32, %arg1: i32, %arg2: i32, %arg3: memref<128x256xbf16, #tpu.memory_space<vmem>>, %arg4: memref<256x128xbf16, #tpu.memory_space<vmem>>, %arg5: memref<1x128xf32, #tpu.memory_space<vmem>>, %arg6: memref<128x128xbf16, #tpu.memory_space<vmem>>, %arg7: memref<128x128xf32, #tpu.memory_space<vmem>>) attributes {dimension_semantics = [#tpu.dimension_semantics<parallel>, #tpu.dimension_semantics<parallel>, #tpu.dimension_semantics<arbitrary>], iteration_bounds = array<i64: 1, 1, 1>, scalar_prefetch = 0 : i64, scratch_operands = 1 : i64, tpu.core_type = #tpu.core_type<tc>, window_params = [{transform_indices = @transform_0, window_bounds = array<i64: 128, 256>}, {transform_indices = @transform_1, window_bounds = array<i64: 256, 128>}, {transform_indices = @transform_2, window_bounds = array<i64: 1, 128>}, {transform_indices = @transform_3, window_bounds = array<i64: 128, 128>}]} {
    %c0_i32 = arith.constant 0 : i32
    %0 = arith.cmpi eq, %arg2, %c0_i32 : i32
    %1 = arith.extui %0 : i1 to i32
    %c0_i32_0 = arith.constant 0 : i32
    %2 = arith.cmpi ne, %1, %c0_i32_0 : i32
    scf.if %2 {
      %cst_10 = arith.constant 0.000000e+00 : f32
      %12 = vector.broadcast %cst_10 : f32 to vector<128x128xf32>
      %c0_11 = arith.constant 0 : index
      %c0_12 = arith.constant 0 : index
      %13 = vector.load %arg7[%c0_11, %c0_12] : memref<128x128xf32, #tpu.memory_space<vmem>>, vector<128x128xf32>
      tpu.vector_store %arg7[%c0_11, %c0_12], %12 {strides = array<i32>} : memref<128x128xf32, #tpu.memory_space<vmem>>, vector<128x128xf32>,
    } else {
    }
    %c0 = arith.constant 0 : index
    %c0_1 = arith.constant 0 : index
    %3 = vector.load %arg7[%c0, %c0_1] : memref<128x128xf32, #tpu.memory_space<vmem>>, vector<128x128xf32>
    %c0_2 = arith.constant 0 : index
    %c0_3 = arith.constant 0 : index
    %4 = vector.load %arg3[%c0_2, %c0_3] : memref<128x256xbf16, #tpu.memory_space<vmem>>, vector<128x256xbf16>
    %c0_4 = arith.constant 0 : index
    %c0_5 = arith.constant 0 : index
    %5 = vector.load %arg4[%c0_4, %c0_5] : memref<256x128xbf16, #tpu.memory_space<vmem>>, vector<256x128xbf16>
    %cst = arith.constant dense<0.000000e+00> : vector<128x128xf32>
    %6 = tpu.matmul %4, %5, %cst {dimension_numbers = #tpu.dot_dimension_numbers<[1], [0], [0], [1], [0, 0, 1, 1], [], []>} : vector<128x256xbf16>, vector<256x128xbf16>, vector<128x128xf32> -> vector<128x128xf32>
    %7 = arith.addf %3, %6 : vector<128x128xf32>
    %c0_6 = arith.constant 0 : index
    %c0_7 = arith.constant 0 : index
    %8 = vector.load %arg7[%c0_6, %c0_7] : memref<128x128xf32, #tpu.memory_space<vmem>>, vector<128x128xf32>
    tpu.vector_store %arg7[%c0_6, %c0_7], %7 {strides = array<i32>} : memref<128x128xf32, #tpu.memory_space<vmem>>, vector<128x128xf32>,
    %c0_i32_8 = arith.constant 0 : i32
    %9 = arith.cmpi eq, %arg2, %c0_i32_8 : i32
    %10 = arith.extui %9 : i1 to i32
    %c0_i32_9 = arith.constant 0 : i32
    %11 = arith.cmpi ne, %10, %c0_i32_9 : i32
    scf.if %11 {
      %c0_10 = arith.constant 0 : index
      %c0_11 = arith.constant 0 : index
      %12 = vector.load %arg7[%c0_10, %c0_11] : memref<128x128xf32, #tpu.memory_space<vmem>>, vector<128x128xf32>
      %c0_12 = arith.constant 0 : index
      %c0_13 = arith.constant 0 : index
      %13 = vector.load %arg5[%c0_12, %c0_13] : memref<1x128xf32, #tpu.memory_space<vmem>>, vector<1x128xf32>
      %14 = vector.broadcast %13 : vector<1x128xf32> to vector<128x128xf32>
      %15 = arith.addf %12, %14 : vector<128x128xf32>
      %cst_14 = arith.constant 0.000000e+00 : f32
      %16 = vector.broadcast %cst_14 : f32 to vector<128x128xf32>
      %17 = arith.subf %16, %15 : vector<128x128xf32>
      %18 = math.exp %17 : vector<128x128xf32>
      %cst_15 = arith.constant 1.000000e+00 : f32
      %19 = vector.broadcast %cst_15 : f32 to vector<128x128xf32>
      %20 = arith.addf %19, %18 : vector<128x128xf32>
      %21 = tpu.reciprocal %20 {approx = true} : vector<128x128xf32> -> vector<128x128xf32>
      %22 = arith.mulf %15, %21 : vector<128x128xf32>
      %23 = arith.truncf %22 : vector<128x128xf32> to vector<128x128xbf16>
      %c0_16 = arith.constant 0 : index
      %c0_17 = arith.constant 0 : index
      %24 = vector.load %arg6[%c0_16, %c0_17] : memref<128x128xbf16, #tpu.memory_space<vmem>>, vector<128x128xbf16>
      tpu.vector_store %arg6[%c0_16, %c0_17], %23 {strides = array<i32>} : memref<128x128xbf16, #tpu.memory_space<vmem>>, vector<128x128xbf16>,
    } else {
    }
    return
  }
  func.func @transform_0(%arg0: i32, %arg1: i32, %arg2: i32) -> (i32, i32) {
    %c0_i32 = arith.constant 0 : i32
    return %arg0, %arg2 : i32, i32
  }
  func.func @transform_1(%arg0: i32, %arg1: i32, %arg2: i32) -> (i32, i32) {
    %c0_i32 = arith.constant 0 : i32
    return %arg2, %arg1 : i32, i32
  }
  func.func @transform_2(%arg0: i32, %arg1: i32, %arg2: i32) -> (i32, i32) {
    %c0_i32 = arith.constant 0 : i32
    %c0_i32_0 = arith.constant 0 : i32
    return %c0_i32, %arg1 : i32, i32
  }
  func.func @transform_3(%arg0: i32, %arg1: i32, %arg2: i32) -> (i32, i32) {
    %c0_i32 = arith.constant 0 : i32
    return %arg0, %arg1 : i32, i32
  }
}

</mosaic_0001>

<bundles_post_ra>
// kernel: tpu_custom_call.1
= control target key start
LH: loop header
LB: loop body
LE: loop exit
PB: predicated region body
PF: predicated region fallthrough
CT: control target
= control target key end

     0   :  { %8 = vsyncpa [#allocation4], 0  ;;  %s1198_s0 = inlined_call_operand.hbm [shape: bf16[128,256], index: 0, kind: input, shape index: {}]   ;;  %s1199_s1 = inlined_call_operand.hbm [shape: bf16[256,128], index: 1, kind: input, shape index: {}]   ;;  %s1200_s2 = inlined_call_operand.vmem [shape: f32[1,128], index: 2, kind: input, shape index: {}]   ;;  %s1201_s3 = inlined_call_operand.hbm [shape: bf16[128,128], index: 3, kind: output, shape index: {}]  }
   0x1   :  { %9 = vsyncpa [#allocation7], 0 }
   0x2   :  { %10 = vsyncpa [#allocation5], 0  ;;  %s1044_s12 = smov [#allocation3]   ;;  %s972_s16 = scalar_lea.hbm %s1198_s0, 2048 }
   0x3   :  { %s16_s13 = sshll.u32 %s1044_s12, 4  ;;  %p973_p0 = scmp.ne.s32.totalorder %s1198_s0, %s972_s16  ;;  %s17_s13 = int_to_ptr.vmem [resolvable:$true] %s16_s13 }
   0x4   :  { %p976_p1 = scmp.lt.u32.totalorder %s972_s16, %s1198_s0 }
   0x6   :  { %p978_p2 = pnand %p976_p1, %p973_p0 }
   0x8   :  { %981 = shalt.err (!%p978_p2)
}
   0x9   :  { %s982_s21 = scalar_lea.vmem %s17_s13, 2048  ;;  %p987_p4 = scmp.lt.s32.totalorder %s17_s13, %s17_s13 }
   0xa   :  { %p983_p3 = scmp.ne.s32.totalorder %s17_s13, %s982_s21  ;;  %p988_p5 = scmp.lt.s32.totalorder %s982_s21, %s982_s21 }
   0xc   :  { %p989_p6 = por %p988_p5, %p987_p4 }
   0xe   :  { %p990_p7 = pnand %p989_p6, %p983_p3 }
  0x10   :  { %993 = shalt.err (!%p990_p7)
}
  0x11   :  { %s1045_s22 = smov 128   ;;  %s1046_s23 = smov 8  }
  0x12   :  { %22 = dma.hbm_to_vmem [thread:$0]  %s1198_s0, 2048, %s17_s13, [#allocation4], %s1045_s22, %s1045_s22, %s1046_s23  }
  0x13   :  { %s1047_s26 = smov [#allocation6]   ;;  %s994_s30 = scalar_lea.hbm %s1199_s1, 2048 }
  0x14   :  { %s28_s27 = sshll.u32 %s1047_s26, 4  ;;  %p995_p8 = scmp.ne.s32.totalorder %s1199_s1, %s994_s30  ;;  %s29_s27 = int_to_ptr.vmem [resolvable:$true] %s28_s27 }
  0x15   :  { %p998_p9 = scmp.lt.u32.totalorder %s994_s30, %s1199_s1 }
  0x17   :  { %p1000_p10 = pnand %p998_p9, %p995_p8 }
  0x19   :  { %1003 = shalt.err (!%p1000_p10)
}
  0x1a   :  { %s1004_s8 = scalar_lea.vmem %s29_s27, 2048  ;;  %p1009_p12 = scmp.lt.s32.totalorder %s29_s27, %s29_s27 }
  0x1b   :  { %p1005_p11 = scmp.ne.s32.totalorder %s29_s27, %s1004_s8  ;;  %p1010_p13 = scmp.lt.s32.totalorder %s1004_s8, %s1004_s8 }
  0x1d   :  { %p1011_p0 = por %p1010_p13, %p1009_p12 }
  0x1f   :  { %p1012_p1 = pnand %p1011_p0, %p1005_p11 }
  0x21   :  { %1015 = shalt.err (!%p1012_p1)
}
  0x22   :  { %s1048_s0 = smov 64   ;;  %s1049_s9 = smov 4  }
  0x23   :  { %34 = dma.hbm_to_vmem [thread:$0]  %s1199_s1, 2048, %s29_s27, [#allocation7], %s1048_s0, %s1048_s0, %s1049_s9  }
  0x24   :  { %1038 = dma.done.wait [#allocation4], 2048  }
  0x25   :  { %1039 = vsyncadd [#allocation4], 4294965248 }
  0x26   :  { %1040 = dma.done.wait [#allocation7], 2048  }
  0x27   :  { %1041 = vsyncadd [#allocation7], 4294965248  ;;  %v868_v0 = vld [vmem:[#allocation6 + $0x40] sm:$0xff]   ;;  %v870_v2 = vld [vmem:[#allocation6 + $0x48] sm:$0xff]  }
  0x28   :  { %v869_v1 = vld [vmem:[#allocation6] sm:$0xff]   ;;  %781 = vmatprep.subr.bf16.mxu0 %v868_v0  ;;  %845 = vmatprep.subr.bf16.mxu1 %v868_v0  ;;  %v871_v3 = vld [vmem:[#allocation6 + $0x8] sm:$0xff]   ;;  %v872_v4 = vld [vmem:[#allocation6 + $0x50] sm:$0xff]  }
  0x29   :  { %782 = vmatpush3.bf16.msra.mxu0 %v869_v1  ;;  %853 = vmatpush3.bf16.msra.mxu1 %v869_v1  ;;  %v873_v5 = vld [vmem:[#allocation6 + $0x10] sm:$0xff]   ;;  %v874_v6 = vld [vmem:[#allocation6 + $0x58] sm:$0xff]   ;;  %v876_v8 = vld [vmem:[#allocation6 + $0x60] sm:$0xff]  }
  0x2a   :  { %783 = vmatprep.subr.bf16.mxu0 %v870_v2  ;;  %846 = vmatprep.subr.bf16.mxu1 %v870_v2  ;;  %v875_v7 = vld [vmem:[#allocation6 + $0x18] sm:$0xff]   ;;  %v877_v9 = vld [vmem:[#allocation6 + $0x20] sm:$0xff]   ;;  %v878_v10 = vld [vmem:[#allocation6 + $0x68] sm:$0xff]  }
  0x2b   :  { %v886_v11 = vld [vmem:[#allocation3 + $0x4] ss:$8 sps:$4 sm:$0xff]   ;;  %v880_v14 = vld [vmem:[#allocation6 + $0x70] sm:$0xff]   ;;  %v882_v16 = vld [vmem:[#allocation6 + $0x78] sm:$0xff]  }
  0x2c   :  { %v889_v12 = vld [vmem:[#allocation3 + $0x44] ss:$8 sps:$4 sm:$0xff]   ;;  %336 = vmatprep.mubr.bf16.mxu0 %v886_v11  ;;  %v881_v15 = vld [vmem:[#allocation6 + $0x30] sm:$0xff]   ;;  %v883_v17 = vld [vmem:[#allocation6 + $0x38] sm:$0xff]  }
  0x2d   :  { %784 = vmatpush3.bf16.msra.mxu0 %v871_v3  ;;  %854 = vmatpush3.bf16.msra.mxu1 %v871_v3  ;;  %v879_v13 = vld [vmem:[#allocation6 + $0x28] sm:$0xff]   ;;  %v890_v20 = vld [vmem:[#allocation3 + $0x14] ss:$8 sps:$4 sm:$0xff]   ;;  %v894_v22 = vld [vmem:[#allocation3 + $0x10] ss:$8 sps:$4 sm:$0xff]  }
  0x2e   :  { %785 = vmatprep.subr.bf16.mxu0 %v872_v4  ;;  %847 = vmatprep.subr.bf16.mxu1 %v872_v4  ;;  %v884_v18 = vld [vmem:[#allocation3] ss:$8 sps:$4 sm:$0xff]   ;;  %v892_v21 = vld [vmem:[#allocation3 + $0x54] ss:$8 sps:$4 sm:$0xff]   ;;  %v895_v23 = vld [vmem:[#allocation3 + $0x50] ss:$8 sps:$4 sm:$0xff]  }
  0x2f   :  { %368 = vmatprep.mubr.bf16.mxu1 %v889_v12  ;;  %v887_v19 = vld [vmem:[#allocation3 + $0x40] ss:$8 sps:$4 sm:$0xff]   ;;  %v896_v24 = vld [vmem:[#allocation3 + $0x24] ss:$8 sps:$4 sm:$0xff]   ;;  %v902_v28 = vld [vmem:[#allocation3 + $0x34] ss:$8 sps:$4 sm:$0xff]  }
  0x30   :  { %v898_v25 = vld [vmem:[#allocation3 + $0x64] ss:$8 sps:$4 sm:$0xff]   ;;  %v900_v26 = vld [vmem:[#allocation3 + $0x20] ss:$8 sps:$4 sm:$0xff]   ;;  %v904_v29 = vld [vmem:[#allocation3 + $0x74] ss:$8 sps:$4 sm:$0xff]  }
  0x31   :  { %786 = vmatpush3.bf16.msra.mxu0 %v873_v5  ;;  %855 = vmatpush3.bf16.msra.mxu1 %v873_v5  ;;  %v901_v27 = vld [vmem:[#allocation3 + $0x60] ss:$8 sps:$4 sm:$0xff]   ;;  %v906_v30 = vld [vmem:[#allocation3 + $0x30] ss:$8 sps:$4 sm:$0xff]  }
  0x32   :  { %787 = vmatprep.subr.bf16.mxu0 %v874_v6  ;;  %848 = vmatprep.subr.bf16.mxu1 %v874_v6  ;;  %v907_v31 = vld [vmem:[#allocation3 + $0x70] ss:$8 sps:$4 sm:$0xff]   ;;  %v1101_v35 = vld [vmem:[%s1200_s2] ss:$0 sm:$0xff]  ;;  %s1050_s2 = smov [#allocation8]  }
  0x33   :  { %s656_s13 = sshll.u32 %s1050_s2, 4  ;;  %s657_s13 = int_to_ptr.vmem [resolvable:$true] %s656_s13 }
  0x34   :  { %s1016_s14 = scalar_lea.vmem %s657_s13, 1024  ;;  %p1021_p3 = scmp.lt.s32.totalorder %s657_s13, %s657_s13 }
  0x35   :  { %788 = vmatpush3.bf16.msra.mxu0 %v875_v7  ;;  %856 = vmatpush3.bf16.msra.mxu1 %v875_v7  ;;  %p1017_p2 = scmp.ne.s32.totalorder %s657_s13, %s1016_s14  ;;  %p1022_p4 = scmp.lt.s32.totalorder %s1016_s14, %s1016_s14 }
  0x36   :  { %789 = vmatprep.subr.bf16.mxu0 %v876_v8  ;;  %849 = vmatprep.subr.bf16.mxu1 %v876_v8 }
  0x37   :  { %p1023_p5 = por %p1022_p4, %p1021_p3 }
  0x39   :  { %790 = vmatpush3.bf16.msra.mxu0 %v877_v9  ;;  %857 = vmatpush3.bf16.msra.mxu1 %v877_v9  ;;  %p1024_p6 = pnand %p1023_p5, %p1017_p2 }
  0x3a   :  { %791 = vmatprep.subr.bf16.mxu0 %v878_v10  ;;  %850 = vmatprep.subr.bf16.mxu1 %v878_v10 }
  0x3d   :  { %792 = vmatpush3.bf16.msra.mxu0 %v879_v13  ;;  %858 = vmatpush3.bf16.msra.mxu1 %v879_v13 }
  0x3e   :  { %793 = vmatprep.subr.bf16.mxu0 %v880_v14  ;;  %851 = vmatprep.subr.bf16.mxu1 %v880_v14 }
  0x41   :  { %794 = vmatpush3.bf16.msra.mxu0 %v881_v15  ;;  %859 = vmatpush3.bf16.msra.mxu1 %v881_v15 }
  0x42   :  { %795 = vmatprep.subr.bf16.mxu0 %v882_v16  ;;  %852 = vmatprep.subr.bf16.mxu1 %v882_v16 }
  0x45   :  { %796 = vmatpush3.bf16.msra.mxu0 %v883_v17  ;;  %860 = vmatpush3.bf16.msra.mxu1 %v883_v17 }
  0x48   :  { %337 = vmatmul.mubr.bf16.vlgmr.msra.gmra.mrb[0].mxu0 %v884_v18  ;;  %369 = vmatmul.mubr.bf16.vlgmr.msra.gmra.mrb[0].mxu1 %v887_v19 }
  0x49   :  { %344 = vmatprep.mubr.bf16.mxu0 %v890_v20  ;;  %376 = vmatprep.mubr.bf16.mxu1 %v892_v21 }
  0x50   :  { %345 = vmatmul.mubr.bf16.gmra.mrb[4].mxu0 %v894_v22  ;;  %377 = vmatmul.mubr.bf16.gmra.mrb[4].mxu1 %v895_v23 }
  0x51   :  { %352 = vmatprep.mubr.bf16.mxu0 %v896_v24  ;;  %384 = vmatprep.mubr.bf16.mxu1 %v898_v25 }
  0x58   :  { %353 = vmatmul.mubr.bf16.gmra.mrb[8].mxu0 %v900_v26  ;;  %385 = vmatmul.mubr.bf16.gmra.mrb[8].mxu1 %v901_v27 }
  0x59   :  { %360 = vmatprep.mubr.bf16.mxu0 %v902_v28  ;;  %392 = vmatprep.mubr.bf16.mxu1 %v904_v29 }
  0x60   :  { %361 = vmatmul.mubr.bf16.gmra.mrb[12].mxu0 %v906_v30  ;;  %393 = vmatmul.mubr.bf16.gmra.mrb[12].mxu1 %v907_v31 }
 0x11b   :  { %v797_v32 = vpop.f32.mrb[0].mxu0  ;;  %v821_v33 = vpop.f32.mrb[0].mxu1 }
 0x11c   :  { %v798_v34 = vpop.f32.mrb[1].mxu0  ;;  %v822_v36 = vpop.f32.mrb[1].mxu1 }
 0x11d   :  { %v799_v37 = vadd.f32 %v798_v34, %v797_v32  ;;  %v823_v38 = vadd.f32 %v822_v36, %v821_v33  ;;  %v800_v39 = vpop.f32.mrb[2].mxu0  ;;  %v824_v40 = vpop.f32.mrb[2].mxu1 }
 0x11e   :  { %v801_v41 = vpop.f32.mrb[3].mxu0  ;;  %v825_v42 = vpop.f32.mrb[3].mxu1 }
 0x11f   :  { %v1104_v43 = vadd.f32 %v799_v37, %v1101_v35  ;;  %v1107_v44 = vadd.f32 %v823_v38, %v1101_v35  ;;  %v802_v45 = vadd.f32 %v801_v41, %v800_v39  ;;  %v826_v46 = vadd.f32 %v825_v42, %v824_v40 }
 0x121   :  { %v475_v47 = vsub.f32 0.0, %v1104_v43  ;;  %v483_v48 = vsub.f32 0.0, %v1107_v44  ;;  %v1112_v49 = vadd.f32 %v802_v45, %v1101_v35  ;;  %v1115_v50 = vadd.f32 %v826_v46, %v1101_v35 }
 0x123   :  { %v491_v51 = vmul.f32 1.442695, %v475_v47  ;;  %v507_v52 = vmul.f32 1.442695, %v483_v48  ;;  %v476_v53 = vsub.f32 0.0, %v1112_v49  ;;  %v484_v54 = vsub.f32 0.0, %v1115_v50 }
 0x124   :  { %v803_v55 = vpop.f32.mrb[4].mxu0  ;;  %v827_v56 = vpop.f32.mrb[4].mxu1 }
 0x125   :  { %908 = vpow2.f32 %v491_v51  ;;  %v493_v57 = vmul.f32 1.442695, %v476_v53  ;;  %v509_v58 = vmul.f32 1.442695, %v484_v54  ;;  %v804_v59 = vpop.f32.mrb[5].mxu0  ;;  %v828_v60 = vpop.f32.mrb[5].mxu1 }
 0x126   :  { %910 = vpow2.f32 %v507_v52  ;;  %v805_v61 = vadd.f32 %v804_v59, %v803_v55  ;;  %v829_v62 = vadd.f32 %v828_v60, %v827_v56  ;;  %v806_v63 = vpop.f32.mrb[6].mxu0  ;;  %v830_v0 = vpop.f32.mrb[6].mxu1 }
 0x127   :  { %912 = vpow2.f32 %v493_v57  ;;  %v807_v1 = vpop.f32.mrb[7].mxu0  ;;  %v831_v2 = vpop.f32.mrb[7].mxu1 }
 0x128   :  { %914 = vpow2.f32 %v509_v58  ;;  %v1120_v3 = vadd.f32 %v805_v61, %v1101_v35  ;;  %v1123_v4 = vadd.f32 %v829_v62, %v1101_v35  ;;  %v808_v5 = vadd.f32 %v807_v1, %v806_v63 }
 0x129   :  { %v832_v6 = vadd.f32 %v831_v2, %v830_v0 }
 0x12a   :  { %v477_v7 = vsub.f32 0.0, %v1120_v3  ;;  %v485_v8 = vsub.f32 0.0, %v1123_v4  ;;  %v1128_v9 = vadd.f32 %v808_v5, %v1101_v35 }
 0x12b   :  { %v1131_v10 = vadd.f32 %v832_v6, %v1101_v35  ;;  %v809_v11 = vpop.f32.mrb[8].mxu0  ;;  %v833_v12 = vpop.f32.mrb[8].mxu1 }
 0x12c   :  { %v495_v13 = vmul.f32 1.442695, %v477_v7  ;;  %v511_v14 = vmul.f32 1.442695, %v485_v8  ;;  %v478_v15 = vsub.f32 0.0, %v1128_v9  ;;  %v810_v16 = vpop.f32.mrb[9].mxu0 }
 0x12d   :  { %v486_v17 = vsub.f32 0.0, %v1131_v10  ;;  %v811_v18 = vadd.f32 %v810_v16, %v809_v11  ;;  %v834_v19 = vpop.f32.mrb[9].mxu1  ;;  %v812_v20 = vpop.f32.mrb[10].mxu0 }
 0x12e   :  { %916 = vpow2.f32 %v495_v13  ;;  %v497_v21 = vmul.f32 1.442695, %v478_v15  ;;  %v835_v22 = vadd.f32 %v834_v19, %v833_v12  ;;  %v836_v23 = vpop.f32.mrb[10].mxu1  ;;  %v813_v24 = vpop.f32.mrb[11].mxu0 }
 0x12f   :  { %v909_v25 = vpop.eup %908  ;;  %918 = vpow2.f32 %v511_v14  ;;  %v513_v26 = vmul.f32 1.442695, %v486_v17  ;;  %v1136_v27 = vadd.f32 %v811_v18, %v1101_v35  ;;  %v814_v28 = vadd.f32 %v813_v24, %v812_v20  ;;  %v837_v29 = vpop.f32.mrb[11].mxu1 }
 0x130   :  { %v911_v30 = vpop.eup %910  ;;  %v523_v31 = vadd.f32 1.0, %v909_v25  ;;  %920 = vpow2.f32 %v497_v21  ;;  %v1139_v32 = vadd.f32 %v835_v22, %v1101_v35  ;;  %v838_v33 = vadd.f32 %v837_v29, %v836_v23 }
 0x131   :  { %v913_v34 = vpop.eup %912  ;;  %v531_v36 = vadd.f32 1.0, %v911_v30  ;;  %922 = vpow2.f32 %v513_v26  ;;  %v479_v37 = vsub.f32 0.0, %v1136_v27  ;;  %v1143_v38 = vadd.f32 %v814_v28, %v1101_v35 }
 0x132   :  { %v915_v39 = vpop.eup %914  ;;  %924 = vrcp.f32 %v523_v31  ;;  %v524_v40 = vadd.f32 1.0, %v913_v34  ;;  %v487_v41 = vsub.f32 0.0, %v1139_v32  ;;  %v1147_v42 = vadd.f32 %v838_v33, %v1101_v35 }
 0x133   :  { %926 = vrcp.f32 %v531_v36  ;;  %v532_v45 = vadd.f32 1.0, %v915_v39  ;;  %v499_v46 = vmul.f32 1.442695, %v479_v37  ;;  %v480_v47 = vsub.f32 0.0, %v1143_v38  ;;  %v815_v48 = vpop.f32.mrb[12].mxu0  ;;  %v839_v51 = vpop.f32.mrb[12].mxu1 }
 0x134   :  { %928 = vrcp.f32 %v524_v40  ;;  %v515_v52 = vmul.f32 1.442695, %v487_v41  ;;  %v488_v53 = vsub.f32 0.0, %v1147_v42  ;;  %v816_v54 = vpop.f32.mrb[13].mxu0  ;;  %v840_v55 = vpop.f32.mrb[13].mxu1 }
 0x135   :  { %930 = vrcp.f32 %v532_v45  ;;  %v501_v56 = vmul.f32 1.442695, %v480_v47  ;;  %v817_v57 = vadd.f32 %v816_v54, %v815_v48  ;;  %v841_v58 = vadd.f32 %v840_v55, %v839_v51  ;;  %v818_v59 = vpop.f32.mrb[14].mxu0  ;;  %v842_v60 = vpop.f32.mrb[14].mxu1 }
 0x136   :  { %932 = vpow2.f32 %v499_v46  ;;  %v517_v61 = vmul.f32 1.442695, %v488_v53  ;;  %v819_v62 = vpop.f32.mrb[15].mxu0  ;;  %v843_v63 = vpop.f32.mrb[15].mxu1 }
 0x137   :  { %934 = vpow2.f32 %v515_v52  ;;  %v1152_v0 = vadd.f32 %v817_v57, %v1101_v35  ;;  %v1155_v1 = vadd.f32 %v841_v58, %v1101_v35  ;;  %v820_v2 = vadd.f32 %v819_v62, %v818_v59 }
 0x138   :  { %v917_v5 = vpop.eup %916  ;;  %936 = vpow2.f32 %v501_v56  ;;  %v844_v6 = vadd.f32 %v843_v63, %v842_v60 }
 0x139   :  { %v919_v7 = vpop.eup %918  ;;  %v525_v8 = vadd.f32 1.0, %v917_v5  ;;  %938 = vpow2.f32 %v517_v61  ;;  %v481_v11 = vsub.f32 0.0, %v1152_v0  ;;  %v489_v12 = vsub.f32 0.0, %v1155_v1 }
 0x13a   :  { %v921_v13 = vpop.eup %920  ;;  %v533_v14 = vadd.f32 1.0, %v919_v7  ;;  %v1160_v15 = vadd.f32 %v820_v2, %v1101_v35  ;;  %v1163_v16 = vadd.f32 %v844_v6, %v1101_v35 }
 0x13b   :  { %v923_v17 = vpop.eup %922  ;;  %940 = vrcp.f32 %v525_v8  ;;  %v526_v18 = vadd.f32 1.0, %v921_v13  ;;  %v503_v19 = vmul.f32 1.442695, %v481_v11  ;;  %v519_v20 = vmul.f32 1.442695, %v489_v12 }
 0x13c   :  { %v925_v21 = vpop.eup %924  ;;  %942 = vrcp.f32 %v533_v14  ;;  %v534_v22 = vadd.f32 1.0, %v923_v17  ;;  %v482_v23 = vsub.f32 0.0, %v1160_v15  ;;  %v490_v24 = vsub.f32 0.0, %v1163_v16 }
 0x13d   :  { %v927_v25 = vpop.eup %926  ;;  %944 = vrcp.f32 %v526_v18  ;;  %v555_v30 = vmul.f32 %v925_v21, %v1104_v43 }
 0x13e   :  { %v929_v26 = vpop.eup %928  ;;  %946 = vrcp.f32 %v534_v22  ;;  %v505_v28 = vmul.f32 1.442695, %v482_v23  ;;  %v521_v29 = vmul.f32 1.442695, %v490_v24  ;;  %v563_v34 = vmul.f32 %v927_v25, %v1107_v44 }
 0x13f   :  { %v931_v35 = vpop.eup %930  ;;  %v556_v31 = vmul.f32 %v929_v26, %v1112_v49  ;;  %948 = vpow2.f32 %v503_v19 }
 0x140   :  { %v933_v33 = vpop.eup %932  ;;  %v564_v36 = vmul.f32 %v931_v35, %v1115_v50  ;;  %950 = vpow2.f32 %v519_v20 }
 0x141   :  { %v935_v37 = vpop.eup %934  ;;  %v737_v39 = vpack.c.bf16 %v556_v31, %v555_v30  ;;  %v527_v40 = vadd.f32 1.0, %v933_v33  ;;  %952 = vpow2.f32 %v505_v28 }
 0x142   :  { %v937_v41 = vpop.eup %936  ;;  %v757_v45 = vpack.c.bf16 %v564_v36, %v563_v34  ;;  %v535_v46 = vadd.f32 1.0, %v935_v37  ;;  %954 = vpow2.f32 %v521_v29 }
 0x143   :  { %v939_v47 = vpop.eup %938  ;;  %738 = vst [vmem:[#allocation8] sm:$0xff] %v737_v39   ;;  %956 = vrcp.f32 %v527_v40  ;;  %v528_v43 = vadd.f32 1.0, %v937_v41 }
 0x144   :  { %777 = vst [vmem:[#allocation8 + $0x20] sm:$0xff] %v757_v45   ;;  %958 = vrcp.f32 %v535_v46  ;;  %v536_v49 = vadd.f32 1.0, %v939_v47 }
 0x145   :  { %v941_v48 = vpop.eup %940  ;;  %960 = vrcp.f32 %v528_v43 }
 0x146   :  { %v943_v44 = vpop.eup %942  ;;  %962 = vrcp.f32 %v536_v49  ;;  %v557_v52 = vmul.f32 %v941_v48, %v1120_v3 }
 0x147   :  { %v945_v50 = vpop.eup %944  ;;  %v565_v55 = vmul.f32 %v943_v44, %v1123_v4 }
 0x148   :  { %v947_v51 = vpop.eup %946  ;;  %v558_v53 = vmul.f32 %v945_v50, %v1128_v9 }
 0x149   :  { %v949_v54 = vpop.eup %948  ;;  %v566_v56 = vmul.f32 %v947_v51, %v1131_v10 }
 0x14a   :  { %v951_v57 = vpop.eup %950  ;;  %v742_v58 = vpack.c.bf16 %v558_v53, %v557_v52  ;;  %v529_v59 = vadd.f32 1.0, %v949_v54 }
 0x14b   :  { %v953_v60 = vpop.eup %952  ;;  %v762_v61 = vpack.c.bf16 %v566_v56, %v565_v55  ;;  %v537_v62 = vadd.f32 1.0, %v951_v57 }
 0x14c   :  { %v955_v63 = vpop.eup %954  ;;  %774 = vst [vmem:[#allocation8 + $0x8] sm:$0xff] %v742_v58   ;;  %964 = vrcp.f32 %v529_v59  ;;  %v530_v2 = vadd.f32 1.0, %v953_v60 }
 0x14d   :  { %v957_v5 = vpop.eup %956  ;;  %778 = vst [vmem:[#allocation8 + $0x28] sm:$0xff] %v762_v61   ;;  %966 = vrcp.f32 %v537_v62  ;;  %v538_v3 = vadd.f32 1.0, %v955_v63 }
 0x14e   :  { %v959_v9 = vpop.eup %958  ;;  %968 = vrcp.f32 %v530_v2  ;;  %v559_v10 = vmul.f32 %v957_v5, %v1136_v27 }
 0x14f   :  { %v961_v6 = vpop.eup %960  ;;  %970 = vrcp.f32 %v538_v3  ;;  %v567_v8 = vmul.f32 %v959_v9, %v1139_v32 }
 0x150   :  { %v963_v4 = vpop.eup %962  ;;  %v560_v7 = vmul.f32 %v961_v6, %v1143_v38 }
 0x151   :  { %v568_v11 = vmul.f32 %v963_v4, %v1147_v42 }
 0x152   :  { %v747_v12 = vpack.c.bf16 %v560_v7, %v559_v10 }
 0x153   :  { %v767_v13 = vpack.c.bf16 %v568_v11, %v567_v8 }
 0x154   :  { %775 = vst [vmem:[#allocation8 + $0x10] sm:$0xff] %v747_v12  }
 0x155   :  { %779 = vst [vmem:[#allocation8 + $0x30] sm:$0xff] %v767_v13  }
 0x156   :  { %v965_v14 = vpop.eup %964 }
 0x157   :  { %v967_v17 = vpop.eup %966  ;;  %v561_v20 = vmul.f32 %v965_v14, %v1152_v0 }
 0x158   :  { %v969_v18 = vpop.eup %968  ;;  %v569_v27 = vmul.f32 %v967_v17, %v1155_v1 }
 0x159   :  { %v971_v19 = vpop.eup %970  ;;  %v562_v21 = vmul.f32 %v969_v18, %v1160_v15 }
 0x15a   :  { %v570_v32 = vmul.f32 %v971_v19, %v1163_v16 }
 0x15b   :  { %v752_v38 = vpack.c.bf16 %v562_v21, %v561_v20 }
 0x15c   :  { %v772_v42 = vpack.c.bf16 %v570_v32, %v569_v27 }
 0x15d   :  { %776 = vst [vmem:[#allocation8 + $0x18] sm:$0xff] %v752_v38  }
 0x15e   :  { %780 = vst [vmem:[#allocation8 + $0x38] sm:$0xff] %v772_v42  }
 0x15f   :  { %1027 = shalt.err (!%p1024_p6)
}
 0x160   :  { %s1028_s17 = scalar_lea.hbm %s1201_s3, 1024 }
 0x161   :  { %p1029_p7 = scmp.ne.s32.totalorder %s1201_s3, %s1028_s17  ;;  %p1032_p8 = scmp.lt.u32.totalorder %s1028_s17, %s1201_s3 }
 0x163   :  { %p1034_p9 = pnand %p1032_p8, %p1029_p7 }
 0x165   :  { %1037 = shalt.err (!%p1034_p9)
}
 0x166   :  { %662 = dma.vmem_to_hbm [thread:$0]  %s657_s13, 1024, %s1201_s3, [#allocation5], %s1048_s0, %s1048_s0, %s1049_s9  }
 0x167   :  { %1042 = dma.done.wait [#allocation5], 1024  }
 0x168   :  { %1043 = vsyncadd [#allocation5], 4294966272 }
 0x169   :  { %666 = vsyncpa [#allocation4], 1 }
 0x16a   :  { %667 = vsyncpa [#allocation7], 1 }
 0x16b   :  { %668 = vsyncpa [#allocation5], 1 }

</bundles_post_ra>
